<compile_context>
chip_gen: v7x
topology: tpu7x:2x2x1
jax: 0.10.0
libtpu: 0.0.40
codegen_flags: <defaults>
</compile_context>

<pallas_src>
import functools

import jax
import jax.numpy as jnp
from jax.experimental import pallas as pl
from jax.experimental.pallas import tpu as pltpu


def _round_up(x: int, m: int) -> int:
    return ((x + m - 1) // m) * m


def _lambda3_kernel(x_ref, out_ref, *, tile: int, rank: int, n_rows: int):
    """Partial sum of |factor[g+1] - factor[g]|^3 over pairs fully inside this tile."""
    j = pl.program_id(0)

    x = x_ref[...].astype(jnp.float32)                     # (tile, 2*rank)
    # Bring row l+1 (mod tile) down to row l; shift = tile-1 == -1 (mod tile),
    # i.e. equivalent to jnp.roll(x, -1, axis=0).  Rides the XLU slot.
    x_next = pltpu.roll(x, shift=tile - 1, axis=0)
    d = x_next - x                                         # d[l] = x[l+1] - x[l]

    # Row validity: drop the wrapped last in-tile row (not a real pair) and any
    # pair whose later row is past the final real row (partial last block /
    # padding).  Masking d itself keeps OOB garbage out of the arithmetic.
    l = jax.lax.broadcasted_iota(jnp.int32, (tile, 1), 0)
    valid = jnp.logical_and(l < tile - 1, j * tile + l < n_rows - 1)
    d = jnp.where(valid, d, 0.0)

    dre = d[:, :rank]
    dim = d[:, rank:]
    s = dre * dre + dim * dim
    # |ddiff|^3 = s * sqrt(s); sqrt rides the EUP slot.
    out_ref[0, 0] = jnp.sum(s * jnp.sqrt(s))


def lambda3_pallas(factor: jax.Array, weight, *, max_tile: int = 2048) -> jax.Array:
    """Lambda3 penalty: weight * sum(sqrt(dre^2 + dim^2)^3) / (N - 1)."""
    n, width = factor.shape
    assert width % 2 == 0, "feature dimension must be even (2 * rank)"
    assert n >= 2, "Lambda3 needs at least two rows (divides by N - 1)"
    rank = width // 2

    itemsize = jnp.dtype(factor.dtype).itemsize
    sublane = {4: 8, 2: 16, 1: 32}.get(itemsize, 8)        # (8,128) f32 / (16,128) bf16 / (32,128) int8
    bytes_per_row = width * itemsize

    # Row tile: multiple of the dtype's sublane packing, capped both at
    # max_tile rows and so the double-buffered streamed input stays <= ~24 MiB.
    budget = 24 * 1024 * 1024
    t_budget = max(sublane, (budget // (2 * bytes_per_row)) // sublane * sublane)
    tile = min(int(max_tile), t_budget, _round_up(n, sublane))
    tile = max(sublane, (tile // sublane) * sublane)
    num_tiles = pl.cdiv(n, tile)

    kernel = functools.partial(_lambda3_kernel, tile=tile, rank=rank, n_rows=n)
    vmem_limit = int(min(64 << 20, 4 * tile * bytes_per_row + (4 << 20)))

    partials = pl.pallas_call(
        kernel,
        out_shape=jax.ShapeDtypeStruct((num_tiles, 1), jnp.float32),
        grid_spec=pltpu.PrefetchScalarGridSpec(
            num_scalar_prefetch=0,
            grid=(num_tiles,),
            in_specs=[pl.BlockSpec((tile, width), lambda j: (j, 0))],
            out_specs=pl.BlockSpec((1, 1), lambda j: (j, 0),
                                   memory_space=pltpu.MemorySpace.SMEM),
        ),
        compiler_params=pltpu.CompilerParams(
            # Every grid step is independent (own output block, no carried
            # scratch), so the row axis can be sharded across v7x's two cores.
            dimension_semantics=("parallel",),
            vmem_limit_bytes=vmem_limit,
        ),
    )(factor)

    # Pairs straddling tile boundaries (at most num_tiles - 1 of them): two
    # tiny strided row slices handled in XLA; negligible HBM traffic.
    bprev = factor[tile - 1 : n - 1 : tile].astype(jnp.float32)
    bnext = factor[tile : n : tile].astype(jnp.float32)
    bd = bnext - bprev
    bs = bd[:, :rank] ** 2 + bd[:, rank:] ** 2
    boundary = jnp.sum(bs * jnp.sqrt(bs))

    total = jnp.sum(partials) + boundary
    # Scale in XLA so one compiled kernel serves all weight / N values.
    return (jnp.asarray(weight, jnp.float32) * total) / jnp.float32(n - 1)


def lambda3_ref(factor: jax.Array, weight) -> jax.Array:
    """Pure-JAX reference mirroring the PyTorch forward."""
    f = factor.astype(jnp.float32)
    ddiff = f[1:] - f[:-1]
    rank = f.shape[1] // 2
    diff = jnp.sqrt(ddiff[:, :rank] ** 2 + ddiff[:, rank:] ** 2) ** 3
    return weight * jnp.sum(diff) / (f.shape[0] - 1)


if __name__ == "__main__":
    key = jax.random.PRNGKey(0)
    k1, k2 = jax.random.split(key)
    weight = 0.05

    # Small shape implied by the module: seq = 8, hidden = 2 * rank = 32.
    factor_small = jax.random.normal(k1, (8, 32), dtype=jnp.float32)
    out_small = jax.block_until_ready(lambda3_pallas(factor_small, weight))
    ref_small = lambda3_ref(factor_small, weight)
    assert jnp.allclose(out_small, ref_small, rtol=1e-5, atol=1e-6), (out_small, ref_small)

    # Modest shape exercising multi-tile streaming, the partial last block and
    # the wrapper-side tile-boundary pairs (max_tile=256 -> 3 tiles over 600 rows).
    factor_big = jax.random.normal(k2, (600, 128), dtype=jnp.float32)
    out_big = jax.block_until_ready(lambda3_pallas(factor_big, weight, max_tile=256))
    ref_big = lambda3_ref(factor_big, weight)
    assert jnp.allclose(out_big, ref_big, rtol=1e-4, atol=1e-5), (out_big, ref_big)

    print("KERNEL_OK")
</pallas_src>

<mosaic_0001>
module attributes {stable_mosaic.version = 11 : i64} {
  func.func @_lambda3_kernel(%arg0: i32, %arg1: memref<8x32xf32, #tpu.memory_space<vmem>>, %arg2: memref<1x1xf32, #tpu.memory_space<smem>>) attributes {dimension_semantics = [#tpu.dimension_semantics<parallel>], iteration_bounds = array<i64: 1>, scalar_prefetch = 0 : i64, scratch_operands = 0 : i64, tpu.core_type = #tpu.core_type<tc>, window_params = [{transform_indices = @transform_0, window_bounds = array<i64: 8, 32>}, {transform_indices = @transform_1, window_bounds = array<i64: 1, 1>}]} {
    %c0 = arith.constant 0 : index
    %c0_0 = arith.constant 0 : index
    %0 = vector.load %arg1[%c0, %c0_0] : memref<8x32xf32, #tpu.memory_space<vmem>>, vector<8x32xf32>
    %c7_i32 = arith.constant 7 : i32
    %1 = tpu.dynamic_rotate %0 by %c7_i32 dim 0 : vector<8x32xf32>, i32 -> vector<8x32xf32>
    %2 = arith.subf %1, %0 : vector<8x32xf32>
    %3 = tpu.iota {dimensions = array<i32: 0>} : vector<8x1xi32>
    %c7_i32_1 = arith.constant 7 : i32
    %4 = vector.broadcast %c7_i32_1 : i32 to vector<8x1xi32>
    %5 = arith.cmpi slt, %3, %4 : vector<8x1xi32>
    %c8_i32 = arith.constant 8 : i32
    %6 = arith.muli %arg0, %c8_i32 : i32
    %7 = vector.broadcast %6 : i32 to vector<8x1xi32>
    %8 = arith.addi %7, %3 : vector<8x1xi32>
    %c7_i32_2 = arith.constant 7 : i32
    %9 = vector.broadcast %c7_i32_2 : i32 to vector<8x1xi32>
    %10 = arith.cmpi slt, %8, %9 : vector<8x1xi32>
    %11 = arith.andi %5, %10 : vector<8x1xi1>
    %cst = arith.constant 0.000000e+00 : f32
    %12 = vector.shape_cast %11 : vector<8x1xi1> to vector<8x1xi1>
    %13 = vector.broadcast %12 : vector<8x1xi1> to vector<8x32xi1>
    %14 = vector.broadcast %cst : f32 to vector<8x32xf32>
    %15 = arith.select %13, %2, %14 : vector<8x32xi1>, vector<8x32xf32>
    %16 = vector.extract_strided_slice %15 {offsets = [0, 0], sizes = [8, 16], strides = [1, 1]} : vector<8x32xf32> to vector<8x16xf32>
    %17 = vector.extract_strided_slice %15 {offsets = [0, 16], sizes = [8, 16], strides = [1, 1]} : vector<8x32xf32> to vector<8x16xf32>
    %18 = arith.mulf %16, %16 : vector<8x16xf32>
    %19 = arith.mulf %17, %17 : vector<8x16xf32>
    %20 = arith.addf %18, %19 : vector<8x16xf32>
    %21 = math.sqrt %20 : vector<8x16xf32>
    %22 = arith.mulf %20, %21 : vector<8x16xf32>
    %23 = vector.shape_cast %22 : vector<8x16xf32> to vector<1x8x16xf32>
    %cst_3 = arith.constant dense<0.000000e+00> : vector<1xf32>
    %24 = vector.multi_reduction <add>, %23, %cst_3 [1, 2] : vector<1x8x16xf32> to vector<1xf32>
    %25 = vector.shape_cast %24 : vector<1xf32> to vector<1x1x1xf32>
    %26 = vector.extract %25[0, 0, 0] : f32 from vector<1x1x1xf32>
    %c0_4 = arith.constant 0 : index
    %c0_5 = arith.constant 0 : index
    %27 = memref.load %arg2[%c0_4, %c0_5] : memref<1x1xf32, #tpu.memory_space<smem>>
    memref.store %26, %arg2[%c0_4, %c0_5] : memref<1x1xf32, #tpu.memory_space<smem>>
    return
  }
  func.func @transform_0(%arg0: i32) -> (i32, i32) {
    %c0_i32 = arith.constant 0 : i32
    %c0_i32_0 = arith.constant 0 : i32
    return %arg0, %c0_i32 : i32, i32
  }
  func.func @transform_1(%arg0: i32) -> (i32, i32) {
    %c0_i32 = arith.constant 0 : i32
    %c0_i32_0 = arith.constant 0 : i32
    return %arg0, %c0_i32 : i32, i32
  }
}

</mosaic_0001>

<bundles_post_ra>
// kernel: tpu_custom_call.1
= control target key start
LH: loop header
LB: loop body
LE: loop exit
PB: predicated region body
PF: predicated region fallthrough
CT: control target
= control target key end

     0   :  { %6 = vsyncpa [#allocation3], 0  ;;  %s156_s0 = inlined_call_operand.hbm [shape: f32[8,32], index: 0, kind: input, shape index: {}]   ;;  %s157_s1 = inlined_call_operand.hbm [shape: f32[1,1], index: 1, kind: output, shape index: {}]  }
   0x1   :  { %7 = vsyncpa [#allocation4], 0  ;;  %s119_s6 = smov [#allocation2]   ;;  %s83_s10 = scalar_lea.hbm %s156_s0, 128 }
   0x2   :  { %s14_s7 = sshll.u32 %s119_s6, 4  ;;  %p84_p0 = scmp.ne.s32.totalorder %s156_s0, %s83_s10  ;;  %s15_s7 = int_to_ptr.vmem [resolvable:$true] %s14_s7 }
   0x3   :  { %p87_p1 = scmp.lt.u32.totalorder %s83_s10, %s156_s0 }
   0x5   :  { %p89_p2 = pnand %p87_p1, %p84_p0 }
   0x7   :  { %92 = shalt.err (!%p89_p2)
}
   0x8   :  { %s93_s15 = scalar_lea.vmem %s15_s7, 128  ;;  %p98_p4 = scmp.lt.s32.totalorder %s15_s7, %s15_s7 }
   0x9   :  { %p94_p3 = scmp.ne.s32.totalorder %s15_s7, %s93_s15  ;;  %p99_p5 = scmp.lt.s32.totalorder %s93_s15, %s93_s15 }
   0xb   :  { %p100_p6 = por %p99_p5, %p98_p4 }
   0xd   :  { %p101_p7 = pnand %p100_p6, %p94_p3 }
   0xf   :  { %104 = shalt.err (!%p101_p7)
}
  0x10   :  { %17 = dma.hbm_to_vmem [thread:$0]  %s156_s0, 128, %s15_s7, [#allocation3]  }
  0x11   :  { %115 = dma.done.wait [#allocation3], 128  }
  0x12   :  { %116 = vsyncadd [#allocation3], 4294967168  ;;  %v24_v0 = vlaneseq  ;;  %v21_v2 = vld [vmem:[#allocation2] sm:$0xff]  ;;  %s120_s18 = smov 112   ;;  %vm49_vm4 = vcmask 130048   ;;  %s105_s21 = scalar_lea.hbm %s157_s1, 16 }
  0x13   :  { %v22_v3 = vrot.slane %v21_v2, 1  ;;  %p106_p8 = scmp.ne.s32.totalorder %s157_s1, %s105_s21  ;;  %p109_p9 = scmp.lt.u32.totalorder %s105_s21, %s157_s1 }
  0x14   :  { %v25_v1 = vshrl.u32 %v24_v0, 7 }
  0x15   :  { %v23_v4 = vsub.f32 %v22_v3, %v21_v2  ;;  %p111_p10 = pnand %p109_p9, %p106_p8 }
  0x16   :  { %vm26_vm0 = vcmp.lt.s32.totalorder %v25_v1, 7 }
  0x17   :  { %vm31_vm1 = vmand %vm26_vm0, %vm26_vm0 }
  0x18   :  { %v34_v5 = vsel %vm31_vm1, %v23_v4, 0.0 }
  0x19   :  { %v35_v6 = vmul.f32 %v34_v5, %v34_v5 }
  0x1b   :  { %37 = vrot.lane.b32.xlu0 %v35_v6, %s120_s18 }
  0x8d   :  { %v38_v7 = vpop.permute.xlu0 %37 }
  0x8e   :  { %v40_v8 = vadd.f32 %v38_v7, %v35_v6 }
  0x90   :  { %81 = vrsqrt.f32 %v40_v8  ;;  %vm43_vm2 = vcmp.eq.f32.partialorder %v40_v8, inf  ;;  %v46_v11 = vand.u32 2147483648, %v40_v8  ;;  %vm45_vm3 = vcmp.eq.f32.partialorder %v40_v8, 0.0 }
  0x9a   :  { %v82_v9 = vpop.eup %81 }
  0x9b   :  { %v42_v10 = vmul.f32 %v82_v9, %v40_v8 }
  0x9d   :  { %v44_v12 = vsel %vm43_vm2, %v40_v8, %v42_v10 }
  0x9e   :  { %v47_v13 = vsel %vm45_vm3, %v46_v11, %v44_v12 }
  0x9f   :  { %v48_v14 = vmul.f32 %v47_v13, %v40_v8 }
  0xa1   :  { %v50_v15 = vsel %vm49_vm4, %v48_v14, 0.0 }
  0xa2   :  { %51 = vadd.xlane.f32.xlu0 %v50_v15 }
 0x12f   :  { %v52_v16 = vpop.xlane.xlu0 %51 }
 0x130   :  { %v53_v17 = vrot.slane %v52_v16, 4 }
 0x132   :  { %v54_v18 = vadd.f32 %v53_v17, %v52_v16 }
 0x134   :  { %v55_v19 = vrot.slane %v54_v18, 2 }
 0x136   :  { %v56_v20 = vadd.f32 %v55_v19, %v54_v18 }
 0x138   :  { %v57_v21 = vrot.slane %v56_v20, 1 }
 0x13a   :  { %v58_v22 = vadd.f32 %v57_v21, %v56_v20 }
 0x13c   :  { %76 = vpush %v58_v22 }
 0x16d   :  { %s77_s0 = spop %76 }
 0x16e   :  { %61 = sst [smem:[#allocation5]] %s77_s0 }
 0x16f   :  { %114 = shalt.err (!%p111_p10)
}
 0x170   :  { %s121_s26 = smov [#allocation5]  }
 0x171   :  { %69 = dma.smem_to_hbm %s121_s26, 16, %s157_s1, [#allocation4]  }
 0x172   :  { %117 = dma.done.wait [#allocation4], 16  }
 0x173   :  { %118 = vsyncadd [#allocation4], 4294967280 }
 0x174   :  { %73 = sfence }
 0x175   :  { %74 = vsyncpa [#allocation3], 1 }
 0x176   :  { %75 = vsyncpa [#allocation4], 1 }

</bundles_post_ra>
